<compile_context>
chip_gen: v5e
topology: v5e:2x2
jax: 0.10.0
libtpu: 0.0.40
codegen_flags: <defaults>
</compile_context>

<pallas_src>
import functools

import jax
import jax.numpy as jnp
from jax.experimental import pallas as pl
from jax.experimental.pallas import tpu as pltpu


def _round_up(x, m):
    return ((x + m - 1) // m) * m


def _triplet_edge_kernel(xi_ref, e_ref, xj_ref,
                         w1a_ref, w1b_ref, w1c_ref, b1_ref,
                         w2_ref, b2_ref, o_ref):
    # Compute dtype follows the (wrapper-cast) weights; activation cast happens here,
    # in-kernel, so the HBM stream stays at the caller's dtype and the cast is free
    # VPU work under DMA slack. No-op when inputs/weights are already the same dtype.
    cdt = w1a_ref.dtype

    # concat([x_i, e, x_j], axis=1) @ W1  ==  x_i @ W1a + e @ W1b + x_j @ W1c
    # Three MXU pushes into one f32 accumulator — no cross-lane concatenation.
    h = jnp.dot(xi_ref[...].astype(cdt), w1a_ref[...],
                preferred_element_type=jnp.float32)
    h = h + jnp.dot(e_ref[...].astype(cdt), w1b_ref[...],
                    preferred_element_type=jnp.float32)
    h = h + jnp.dot(xj_ref[...].astype(cdt), w1c_ref[...],
                    preferred_element_type=jnp.float32)
    h = h + b1_ref[...]                      # bias (f32) on the f32 accumulator
    h = jnp.maximum(h, 0.0)                  # ReLU on the f32 accumulator

    # Second Linear (no activation: on_last=False). Cast to weight dtype so the bf16
    # path stays on the fast MXU pipeline; no-op for f32 weights.
    y = jnp.dot(h.astype(w2_ref.dtype), w2_ref[...],
                preferred_element_type=jnp.float32)
    y = y + b2_ref[...]
    o_ref[...] = y.astype(o_ref.dtype)


@functools.partial(jax.jit,
                   static_argnames=("tile_n", "compute_dtype", "out_dtype",
                                    "activation_buffers"))
def triplet_edge_net(x_i, edge_feature, x_j, w1, b1, w2, b2, *,
                     tile_n=2048, compute_dtype=jnp.bfloat16, out_dtype=None,
                     activation_buffers=2):
    """Fused TripletEdgeNet forward: (implicit concat) -> Linear -> ReLU -> Linear.

    Weights are stored pre-transposed vs. PyTorch: w1 (d_in, d_hid), w2 (d_hid, d_edge),
    so the kernel does plain x @ W + b on the MXU.
    """
    n, dim_node = x_i.shape
    dim_edge = edge_feature.shape[1]
    d_in = 2 * dim_node + dim_edge
    d_hid = w1.shape[1]
    assert w1.shape == (d_in, d_hid)
    assert w2.shape == (d_hid, dim_edge)

    if out_dtype is None:
        out_dtype = x_i.dtype

    # Empty graphs: nothing to do (grid=(0,) would leave the output path undefined).
    if n == 0:
        return jnp.zeros((0, dim_edge), out_dtype)

    # Split W1 by input-row blocks, matching the [x_i | edge | x_j] concat order.
    w1a = w1[:dim_node]
    w1b = w1[dim_node:dim_node + dim_edge]
    w1c = w1[dim_node + dim_edge:]

    # Only the (tiny, VMEM-resident) weights are cast in the wrapper. Activations are
    # cast inside the kernel — a wrapper-side cast would be a separate HBM pass.
    if compute_dtype is not None:
        w1a = w1a.astype(compute_dtype)
        w1b = w1b.astype(compute_dtype)
        w1c = w1c.astype(compute_dtype)
        w2 = w2.astype(compute_dtype)

    b1_2d = b1.reshape(1, d_hid).astype(jnp.float32)
    b2_2d = b2.reshape(1, dim_edge).astype(jnp.float32)

    # Row tile: as large as possible (amortizes ~600-cycle per-step overhead; VMEM use
    # is tiny), but clamped so moderate/large N still yields >= 2 grid steps — on v7x
    # that is what lets the "parallel" row axis shard across both TensorCores.
    tile = min(tile_n, _round_up(n, 8))
    if n >= 64:
        tile = min(tile, _round_up(pl.cdiv(n, 2), 8))
    tile = max(8, tile)
    grid = (pl.cdiv(n, tile),)   # no wrapper padding: Pallas masks the partial block

    act_itemsize = jnp.dtype(x_i.dtype).itemsize
    w_itemsize = jnp.dtype(w2.dtype).itemsize
    cost = pl.CostEstimate(
        flops=2 * n * (d_in * d_hid + d_hid * dim_edge),
        transcendentals=0,
        bytes_accessed=(n * d_in * act_itemsize
                        + (d_in * d_hid + d_hid * dim_edge) * w_itemsize
                        + (d_hid + dim_edge) * 4
                        + n * dim_edge * jnp.dtype(out_dtype).itemsize),
    )

    # Optional deeper buffering for the narrow activation streams (v7x latency hiding).
    if activation_buffers != 2:
        act_kw = dict(pipeline_mode=pl.Buffered(activation_buffers))
    else:
        act_kw = {}

    out = pl.pallas_call(
        _triplet_edge_kernel,
        out_shape=jax.ShapeDtypeStruct((n, dim_edge), out_dtype),
        grid_spec=pltpu.PrefetchScalarGridSpec(
            num_scalar_prefetch=0,
            grid=grid,
            in_specs=[
                pl.BlockSpec((tile, dim_node), lambda i: (i, 0), **act_kw),  # x_i rows
                pl.BlockSpec((tile, dim_edge), lambda i: (i, 0), **act_kw),  # edge rows
                pl.BlockSpec((tile, dim_node), lambda i: (i, 0), **act_kw),  # x_j rows
                pl.BlockSpec((dim_node, d_hid), lambda i: (0, 0)),   # W1a (resident)
                pl.BlockSpec((dim_edge, d_hid), lambda i: (0, 0)),   # W1b (resident)
                pl.BlockSpec((dim_node, d_hid), lambda i: (0, 0)),   # W1c (resident)
                pl.BlockSpec((1, d_hid), lambda i: (0, 0)),          # b1 (f32)
                pl.BlockSpec((d_hid, dim_edge), lambda i: (0, 0)),   # W2 (resident)
                pl.BlockSpec((1, dim_edge), lambda i: (0, 0)),       # b2 (f32)
            ],
            out_specs=pl.BlockSpec((tile, dim_edge), lambda i: (i, 0)),
        ),
        # "parallel" only buys cross-TC sharding on v7x; it is ~neutral on v5e/v6e
        # (single TensorCore) — the real levers there are dtype and tile size.
        compiler_params=pltpu.CompilerParams(
            dimension_semantics=("parallel",)),
        cost_estimate=cost,
    )(x_i, edge_feature, x_j, w1a, w1b, w1c, b1_2d, w2, b2_2d)

    return out


def init_params(key, dim_node, dim_edge, dtype=jnp.float32):
    """Deterministic synthetic parameters (shapes match build_mlp in __init__)."""
    d_in = 2 * dim_node + dim_edge
    d_hid = 2 * (dim_node + dim_edge)
    k1, k2, k3, k4 = jax.random.split(key, 4)
    lim1 = 1.0 / (d_in ** 0.5)
    lim2 = 1.0 / (d_hid ** 0.5)
    w1 = jax.random.uniform(k1, (d_in, d_hid), dtype, -lim1, lim1)
    b1 = jax.random.uniform(k2, (d_hid,), dtype, -lim1, lim1)
    w2 = jax.random.uniform(k3, (d_hid, dim_edge), dtype, -lim2, lim2)
    b2 = jax.random.uniform(k4, (dim_edge,), dtype, -lim2, lim2)
    return w1, b1, w2, b2


def _reference(x_i, e, x_j, w1, b1, w2, b2):
    x = jnp.concatenate([x_i, e, x_j], axis=1)
    h = jnp.maximum(x @ w1 + b1, 0.0)
    return h @ w2 + b2


if __name__ == "__main__":
    dim_node = 32
    dim_edge = 32

    key = jax.random.PRNGKey(0)
    kx, ke, kxj, kp = jax.random.split(key, 4)
    w1, b1, w2, b2 = init_params(kp, dim_node, dim_edge)

    # Case 1: tiny n_edge, not a multiple of 8 -> exercises the masked partial block.
    n_edges = 10
    x_i = jax.random.normal(kx, (n_edges, dim_node), jnp.float32)
    edge_feature = jax.random.normal(ke, (n_edges, dim_edge), jnp.float32)
    x_j = jax.random.normal(kxj, (n_edges, dim_node), jnp.float32)
    ref = _reference(x_i, edge_feature, x_j, w1, b1, w2, b2)

    # Default path: bf16 compute, f32 MXU accumulation, f32 output.
    out = jax.block_until_ready(
        triplet_edge_net(x_i, edge_feature, x_j, w1, b1, w2, b2))
    assert out.shape == (n_edges, dim_edge)
    assert out.dtype == jnp.float32
    assert jnp.allclose(out, ref, atol=1.5e-1, rtol=1.5e-1)

    # Full-precision path: bit-faithful to the reference within f32 matmul tolerance.
    out_f32 = jax.block_until_ready(
        triplet_edge_net(x_i, edge_feature, x_j, w1, b1, w2, b2,
                         compute_dtype=jnp.float32))
    assert jnp.allclose(out_f32, ref, atol=1e-4, rtol=1e-4)

    # Case 2: larger n_edge -> multi-step grid (exercises the >=2-step v7x clamp) and
    # a bf16 output for a bf16 consumer.
    n_big = 300
    kx2, ke2, kxj2 = jax.random.split(jax.random.PRNGKey(1), 3)
    x_i2 = jax.random.normal(kx2, (n_big, dim_node), jnp.float32)
    e2 = jax.random.normal(ke2, (n_big, dim_edge), jnp.float32)
    x_j2 = jax.random.normal(kxj2, (n_big, dim_node), jnp.float32)
    ref2 = _reference(x_i2, e2, x_j2, w1, b1, w2, b2)
    out2 = jax.block_until_ready(
        triplet_edge_net(x_i2, e2, x_j2, w1, b1, w2, b2, out_dtype=jnp.bfloat16))
    assert out2.shape == (n_big, dim_edge)
    assert out2.dtype == jnp.bfloat16
    assert jnp.allclose(out2.astype(jnp.float32), ref2, atol=2e-1, rtol=2e-1)

    # Case 3: empty graph (no edges) -> early-return guard.
    out0 = triplet_edge_net(x_i[:0], edge_feature[:0], x_j[:0], w1, b1, w2, b2)
    assert out0.shape == (0, dim_edge)

    print("KERNEL_OK")
</pallas_src>

<mosaic_0001>
module attributes {stable_mosaic.version = 11 : i64} {
  func.func @_triplet_edge_kernel(%arg0: i32, %arg1: memref<16x32xf32, #tpu.memory_space<vmem>>, %arg2: memref<16x32xf32, #tpu.memory_space<vmem>>, %arg3: memref<16x32xf32, #tpu.memory_space<vmem>>, %arg4: memref<32x128xbf16, #tpu.memory_space<vmem>>, %arg5: memref<32x128xbf16, #tpu.memory_space<vmem>>, %arg6: memref<32x128xbf16, #tpu.memory_space<vmem>>, %arg7: memref<1x128xf32, #tpu.memory_space<vmem>>, %arg8: memref<128x32xbf16, #tpu.memory_space<vmem>>, %arg9: memref<1x32xf32, #tpu.memory_space<vmem>>, %arg10: memref<16x32xf32, #tpu.memory_space<vmem>>) attributes {dimension_semantics = [#tpu.dimension_semantics<parallel>], iteration_bounds = array<i64: 1>, scalar_prefetch = 0 : i64, scratch_operands = 0 : i64, tpu.core_type = #tpu.core_type<tc>, window_params = [{transform_indices = @transform_0, window_bounds = array<i64: 16, 32>}, {transform_indices = @transform_1, window_bounds = array<i64: 16, 32>}, {transform_indices = @transform_2, window_bounds = array<i64: 16, 32>}, {pipeline_mode = #tpu.pipeline_mode<synchronous>, transform_indices = @transform_3, window_bounds = array<i64: 32, 128>}, {pipeline_mode = #tpu.pipeline_mode<synchronous>, transform_indices = @transform_4, window_bounds = array<i64: 32, 128>}, {pipeline_mode = #tpu.pipeline_mode<synchronous>, transform_indices = @transform_5, window_bounds = array<i64: 32, 128>}, {pipeline_mode = #tpu.pipeline_mode<synchronous>, transform_indices = @transform_6, window_bounds = array<i64: 1, 128>}, {pipeline_mode = #tpu.pipeline_mode<synchronous>, transform_indices = @transform_7, window_bounds = array<i64: 128, 32>}, {pipeline_mode = #tpu.pipeline_mode<synchronous>, transform_indices = @transform_8, window_bounds = array<i64: 1, 32>}, {transform_indices = @transform_9, window_bounds = array<i64: 16, 32>}]} {
    %c0 = arith.constant 0 : index
    %c0_0 = arith.constant 0 : index
    %0 = vector.load %arg1[%c0, %c0_0] : memref<16x32xf32, #tpu.memory_space<vmem>>, vector<16x32xf32>
    %1 = arith.truncf %0 : vector<16x32xf32> to vector<16x32xbf16>
    %c0_1 = arith.constant 0 : index
    %c0_2 = arith.constant 0 : index
    %2 = vector.load %arg4[%c0_1, %c0_2] : memref<32x128xbf16, #tpu.memory_space<vmem>>, vector<32x128xbf16>
    %cst = arith.constant dense<0.000000e+00> : vector<16x128xf32>
    %3 = tpu.matmul %1, %2, %cst {dimension_numbers = #tpu.dot_dimension_numbers<[1], [0], [0], [1], [0, 0, 1, 1], [], []>} : vector<16x32xbf16>, vector<32x128xbf16>, vector<16x128xf32> -> vector<16x128xf32>
    %c0_3 = arith.constant 0 : index
    %c0_4 = arith.constant 0 : index
    %4 = vector.load %arg2[%c0_3, %c0_4] : memref<16x32xf32, #tpu.memory_space<vmem>>, vector<16x32xf32>
    %5 = arith.truncf %4 : vector<16x32xf32> to vector<16x32xbf16>
    %c0_5 = arith.constant 0 : index
    %c0_6 = arith.constant 0 : index
    %6 = vector.load %arg5[%c0_5, %c0_6] : memref<32x128xbf16, #tpu.memory_space<vmem>>, vector<32x128xbf16>
    %cst_7 = arith.constant dense<0.000000e+00> : vector<16x128xf32>
    %7 = tpu.matmul %5, %6, %cst_7 {dimension_numbers = #tpu.dot_dimension_numbers<[1], [0], [0], [1], [0, 0, 1, 1], [], []>} : vector<16x32xbf16>, vector<32x128xbf16>, vector<16x128xf32> -> vector<16x128xf32>
    %8 = arith.addf %3, %7 : vector<16x128xf32>
    %c0_8 = arith.constant 0 : index
    %c0_9 = arith.constant 0 : index
    %9 = vector.load %arg3[%c0_8, %c0_9] : memref<16x32xf32, #tpu.memory_space<vmem>>, vector<16x32xf32>
    %10 = arith.truncf %9 : vector<16x32xf32> to vector<16x32xbf16>
    %c0_10 = arith.constant 0 : index
    %c0_11 = arith.constant 0 : index
    %11 = vector.load %arg6[%c0_10, %c0_11] : memref<32x128xbf16, #tpu.memory_space<vmem>>, vector<32x128xbf16>
    %cst_12 = arith.constant dense<0.000000e+00> : vector<16x128xf32>
    %12 = tpu.matmul %10, %11, %cst_12 {dimension_numbers = #tpu.dot_dimension_numbers<[1], [0], [0], [1], [0, 0, 1, 1], [], []>} : vector<16x32xbf16>, vector<32x128xbf16>, vector<16x128xf32> -> vector<16x128xf32>
    %13 = arith.addf %8, %12 : vector<16x128xf32>
    %c0_13 = arith.constant 0 : index
    %c0_14 = arith.constant 0 : index
    %14 = vector.load %arg7[%c0_13, %c0_14] : memref<1x128xf32, #tpu.memory_space<vmem>>, vector<1x128xf32>
    %15 = vector.broadcast %14 : vector<1x128xf32> to vector<16x128xf32>
    %16 = arith.addf %13, %15 : vector<16x128xf32>
    %cst_15 = arith.constant 0.000000e+00 : f32
    %17 = vector.broadcast %cst_15 : f32 to vector<16x128xf32>
    %18 = arith.maximumf %16, %17 : vector<16x128xf32>
    %19 = arith.truncf %18 : vector<16x128xf32> to vector<16x128xbf16>
    %c0_16 = arith.constant 0 : index
    %c0_17 = arith.constant 0 : index
    %20 = vector.load %arg8[%c0_16, %c0_17] : memref<128x32xbf16, #tpu.memory_space<vmem>>, vector<128x32xbf16>
    %cst_18 = arith.constant dense<0.000000e+00> : vector<16x32xf32>
    %21 = tpu.matmul %19, %20, %cst_18 {dimension_numbers = #tpu.dot_dimension_numbers<[1], [0], [0], [1], [0, 0, 1, 1], [], []>} : vector<16x128xbf16>, vector<128x32xbf16>, vector<16x32xf32> -> vector<16x32xf32>
    %c0_19 = arith.constant 0 : index
    %c0_20 = arith.constant 0 : index
    %22 = vector.load %arg9[%c0_19, %c0_20] : memref<1x32xf32, #tpu.memory_space<vmem>>, vector<1x32xf32>
    %23 = vector.broadcast %22 : vector<1x32xf32> to vector<16x32xf32>
    %24 = arith.addf %21, %23 : vector<16x32xf32>
    %c0_21 = arith.constant 0 : index
    %c0_22 = arith.constant 0 : index
    %25 = vector.load %arg10[%c0_21, %c0_22] : memref<16x32xf32, #tpu.memory_space<vmem>>, vector<16x32xf32>
    tpu.vector_store %arg10[%c0_21, %c0_22], %24 {strides = array<i32>} : memref<16x32xf32, #tpu.memory_space<vmem>>, vector<16x32xf32>,
    return
  }
  func.func @transform_0(%arg0: i32) -> (i32, i32) {
    %c0_i32 = arith.constant 0 : i32
    %c0_i32_0 = arith.constant 0 : i32
    return %arg0, %c0_i32 : i32, i32
  }
  func.func @transform_1(%arg0: i32) -> (i32, i32) {
    %c0_i32 = arith.constant 0 : i32
    %c0_i32_0 = arith.constant 0 : i32
    return %arg0, %c0_i32 : i32, i32
  }
  func.func @transform_2(%arg0: i32) -> (i32, i32) {
    %c0_i32 = arith.constant 0 : i32
    %c0_i32_0 = arith.constant 0 : i32
    return %arg0, %c0_i32 : i32, i32
  }
  func.func @transform_3(%arg0: i32) -> (i32, i32) {
    %c0_i32 = arith.constant 0 : i32
    %c0_i32_0 = arith.constant 0 : i32
    %c0_i32_1 = arith.constant 0 : i32
    return %c0_i32, %c0_i32_0 : i32, i32
  }
  func.func @transform_4(%arg0: i32) -> (i32, i32) {
    %c0_i32 = arith.constant 0 : i32
    %c0_i32_0 = arith.constant 0 : i32
    %c0_i32_1 = arith.constant 0 : i32
    return %c0_i32, %c0_i32_0 : i32, i32
  }
  func.func @transform_5(%arg0: i32) -> (i32, i32) {
    %c0_i32 = arith.constant 0 : i32
    %c0_i32_0 = arith.constant 0 : i32
    %c0_i32_1 = arith.constant 0 : i32
    return %c0_i32, %c0_i32_0 : i32, i32
  }
  func.func @transform_6(%arg0: i32) -> (i32, i32) {
    %c0_i32 = arith.constant 0 : i32
    %c0_i32_0 = arith.constant 0 : i32
    %c0_i32_1 = arith.constant 0 : i32
    return %c0_i32, %c0_i32_0 : i32, i32
  }
  func.func @transform_7(%arg0: i32) -> (i32, i32) {
    %c0_i32 = arith.constant 0 : i32
    %c0_i32_0 = arith.constant 0 : i32
    %c0_i32_1 = arith.constant 0 : i32
    return %c0_i32, %c0_i32_0 : i32, i32
  }
  func.func @transform_8(%arg0: i32) -> (i32, i32) {
    %c0_i32 = arith.constant 0 : i32
    %c0_i32_0 = arith.constant 0 : i32
    %c0_i32_1 = arith.constant 0 : i32
    return %c0_i32, %c0_i32_0 : i32, i32
  }
  func.func @transform_9(%arg0: i32) -> (i32, i32) {
    %c0_i32 = arith.constant 0 : i32
    %c0_i32_0 = arith.constant 0 : i32
    return %arg0, %c0_i32 : i32, i32
  }
}

</mosaic_0001>

<bundles_post_ra>
// kernel: triplet_edge_net.1
= control target key start
LH: loop header
LB: loop body
LE: loop exit
PB: predicated region body
PF: predicated region fallthrough
CT: control target
= control target key end

     0   :  { %s487_s0 = inlined_call_operand.vmem [shape: f32[10,32], index: 0, kind: input, shape index: {}]   ;;  %s488_s1 = inlined_call_operand.vmem [shape: f32[10,32], index: 1, kind: input, shape index: {}]   ;;  %s489_s2 = inlined_call_operand.vmem [shape: f32[10,32], index: 2, kind: input, shape index: {}]   ;;  %s490_s3 = inlined_call_operand.vmem [shape: bf16[32,128], index: 3, kind: input, shape index: {}]   ;;  %s491_s4 = inlined_call_operand.vmem [shape: bf16[32,128], index: 4, kind: input, shape index: {}]   ;;  %s492_s5 = inlined_call_operand.vmem [shape: bf16[32,128], index: 5, kind: input, shape index: {}]   ;;  %s493_s6 = inlined_call_operand.vmem [shape: f32[1,128], index: 6, kind: input, shape index: {}]   ;;  %s494_s7 = inlined_call_operand.vmem [shape: bf16[128,32], index: 7, kind: input, shape index: {}]   ;;  %s495_s8 = inlined_call_operand.vmem [shape: f32[1,32], index: 8, kind: input, shape index: {}]   ;;  %s496_s9 = inlined_call_operand.hbm [shape: f32[10,32], index: 9, kind: output, shape index: {}]  }
   0x1   :  { %v318_v0 = vld [vmem:[%s491_s4 + $0x8] sm:$0xff]  ;;  %v317_v3 = vld [vmem:[%s491_s4] sm:$0xff]  ;;  %v328_v12 = vld [vmem:[%s494_s7 + $0x38] sm:$0xff] }
   0x2   :  { %v316_v1 = vld [vmem:[%s490_s3 + $0x8] sm:$0xff]  ;;  %v315_v4 = vld [vmem:[%s490_s3] sm:$0xff]  ;;  %70 = vmatpush.bf16.msra.mxu0 %v318_v0 }
   0x3   :  { %v320_v2 = vld [vmem:[%s492_s5 + $0x8] sm:$0xff]  ;;  %v319_v5 = vld [vmem:[%s492_s5] sm:$0xff]  ;;  %99 = vmatpush.bf16.msra.mxu1 %v316_v1 }
   0x4   :  { %v41_v6 = vld [vmem:[%s488_s1] sm:$0xff]  ;;  %v42_v7 = vld [vmem:[%s488_s1 + $0x8] sm:$0xff]  ;;  %135 = vmatpush.bf16.msra.mxu2 %v320_v2 }
   0x5   :  { %v34_v8 = vld [vmem:[%s487_s0] sm:$0xff]  ;;  %v35_v9 = vld [vmem:[%s487_s0 + $0x8] sm:$0xff]  ;;  %v43_v13 = vpack.c.bf16 %v42_v7, %v41_v6 }
   0x6   :  { %v107_v10 = vld [vmem:[%s489_s2] sm:$0xff]  ;;  %v108_v11 = vld [vmem:[%s489_s2 + $0x8] sm:$0xff]  ;;  %v36_v14 = vpack.c.bf16 %v35_v9, %v34_v8 }
   0x7   :  { %14 = vsyncpa [#allocation3], 0  ;;  %71 = vmatpush.bf16.msra.mxu0 %v317_v3  ;;  %100 = vmatpush.bf16.msra.mxu1 %v315_v4  ;;  %vm60_vm0 = vcmask 261120   ;;  %v109_v15 = vpack.c.bf16 %v108_v11, %v107_v10  ;;  %v327_v16 = vld [vmem:[%s494_s7 + $0x30] sm:$0xff]  ;;  %v326_v17 = vld [vmem:[%s494_s7 + $0x28] sm:$0xff]  ;;  %s360_s25 = smov [#allocation2]  }
   0x8   :  { %136 = vmatpush.bf16.msra.mxu2 %v319_v5  ;;  %222 = vmatpush.bf16.msra.mxu3 %v328_v12  ;;  %v325_v18 = vld [vmem:[%s494_s7 + $0x20] sm:$0xff]  ;;  %v324_v19 = vld [vmem:[%s494_s7 + $0x18] sm:$0xff]  ;;  %v323_v20 = vld [vmem:[%s494_s7 + $0x10] sm:$0xff]  ;;  %s242_s4 = sshll.u32 %s360_s25, 4  ;;  %s244_s26 = sshll.u32 %s496_s9, 4  ;;  %s243_s4 = int_to_ptr.vmem [resolvable:$true] %s242_s4  ;;  %s245_s26 = int_to_ptr.hbm [resolvable:$true] %s244_s26 }
   0x9   :  { %v322_v21 = vld [vmem:[%s494_s7 + $0x8] sm:$0xff]  ;;  %v321_v22 = vld [vmem:[%s494_s7] sm:$0xff]  ;;  %s361_s5 = smov 128   ;;  %s362_s27 = smov 8  }
   0xa   :  { %264 = vmatmul.msk.bf16.vlgmr.msra.gmra.mxu0 %vm60_vm0, %v43_v13  ;;  %273 = vmatmul.msk.bf16.vlgmr.msra.gmra.mxu1 %vm60_vm0, %v36_v14  ;;  %v332_v30 = vld [vmem:[%s493_s6] ss:$0 sm:$0xff] }
   0xb   :  { %282 = vmatmul.msk.bf16.vlgmr.msra.gmra.mxu2 %vm60_vm0, %v109_v15  ;;  %v333_v39 = vld [vmem:[%s495_s8] ss:$0 sm:$0xff] }
   0xc   :  { %223 = vmatpush.bf16.msra.mxu3 %v327_v16 }
  0x10   :  { %224 = vmatpush.bf16.msra.mxu3 %v326_v17 }
  0x14   :  { %225 = vmatpush.bf16.msra.mxu3 %v325_v18 }
  0x18   :  { %226 = vmatpush.bf16.msra.mxu3 %v324_v19 }
  0x1c   :  { %227 = vmatpush.bf16.msra.mxu3 %v323_v20 }
  0x20   :  { %228 = vmatpush.bf16.msra.mxu3 %v322_v21 }
  0x24   :  { %229 = vmatpush.bf16.msra.mxu3 %v321_v22 }
  0x87   :  { %v73_v23 = vpop.f32.mrf.mxu0  ;;  %v102_v24 = vpop.f32.mrf.mxu1 }
  0x88   :  { %v103_v26 = vadd.f32 %v102_v24, %v73_v23 }
  0x8e   :  { %v138_v25 = vpop.f32.mrf.mxu2 }
  0x8f   :  { %v75_v27 = vpop.f32.mrf.mxu0  ;;  %v104_v28 = vpop.f32.mrf.mxu1  ;;  %v143_v29 = vadd.f32 %v138_v25, %v103_v26 }
  0x90   :  { %v105_v31 = vadd.f32 %v104_v28, %v75_v27 }
  0x91   :  { %v149_v33 = vadd.f32 %v332_v30, %v143_v29 }
  0x93   :  { %v151_v36 = vmax.f32 %v149_v33, 0.0 }
  0x96   :  { %v140_v32 = vpop.f32.mrf.mxu2 }
  0x97   :  { %v144_v34 = vadd.f32 %v140_v32, %v105_v31 }
  0x99   :  { %v150_v35 = vadd.f32 %v332_v30, %v144_v34 }
  0x9b   :  { %v152_v37 = vmax.f32 %v150_v35, 0.0 }
  0x9d   :  { %v153_v38 = vpack.c.bf16 %v152_v37, %v151_v36 }
  0x9f   :  { %230 = vmatmul.bf16.vlgmr.msra.gmra.mxu3 %v153_v38 }
 0x122   :  { %v231_v40 = vpop.f32.mrf.mxu3 }
 0x123   :  { %v232_v41 = vadd.f32 %v333_v39, %v231_v40 }
 0x125   :  { %236 = vst.msk [vmem:[#allocation2] sm:$0xff] %vm60_vm0, %v232_v41 }
 0x12a   :  { %v233_v42 = vpop.f32.mrf.mxu3 }
 0x12b   :  { %v234_v43 = vadd.f32 %v333_v39, %v233_v42 }
 0x12d   :  { %237 = vst.msk [vmem:[#allocation2 + $0x8] sm:$0xff] %vm60_vm0, %v234_v43 }
 0x12e   :  { %250 = dma.vmem_to_hbm [thread:$0]  %s243_s4, 256, %s245_s26, [#allocation3], %s361_s5, %s361_s5, %s362_s27  }
 0x12f   :  { %358 = dma.done.wait [#allocation3], 256  }
 0x130   :  { %359 = vsyncadd [#allocation3], 4294967040 }
 0x131   :  { %255 = vsyncpa [#allocation3], 1 }

</bundles_post_ra>
